<compile_context>
chip_gen: v7x
topology: tpu7x:2x2x1
jax: 0.10.0
libtpu: 0.0.40
codegen_flags: <defaults>
</compile_context>

<pallas_src>
import functools
import math

import jax
import jax.numpy as jnp
from jax.experimental import pallas as pl
from jax.experimental.pallas import tpu as pltpu

LN_EPS = 1e-5  # torch nn.LayerNorm default


def _layernorm(x, gamma, beta):
    # x: (rows, D) f32; gamma/beta: (1, D) f32
    mean = jnp.mean(x, axis=-1, keepdims=True)
    var = jnp.mean((x - mean) ** 2, axis=-1, keepdims=True)
    inv = jax.lax.rsqrt(var + LN_EPS)
    return (x - mean) * inv * gamma + beta


# ----------------------- Kernel A: LN1 + fused QKV projection ----------------------
def ln_qkv_kernel(x_ref, g1_ref, be1_ref, wqkv_ref, bqkv_ref, q_ref, k_ref, v_ref):
    d = x_ref.shape[-1]
    x = x_ref[...]                                           # (TR, D) f32
    xn = _layernorm(x, g1_ref[...], be1_ref[...])            # f32
    xnb = xn.astype(jnp.bfloat16)                            # bf16 MXU operand, f32 acc
    qkv = jnp.dot(xnb, wqkv_ref[...],
                  preferred_element_type=jnp.float32) + bqkv_ref[...]   # (TR, 3D) f32
    # static lane slices (free vreg selects when D is a multiple of 128)
    q_ref[...] = qkv[:, :d].astype(q_ref.dtype)
    k_ref[...] = qkv[:, d:2 * d].astype(k_ref.dtype)
    v_ref[...] = qkv[:, 2 * d:].astype(v_ref.dtype)


# ----- Kernel B: batched attention + out-proj + residual + LN2 + MLP + residual ----
def attn_proj_mlp_kernel(q_ref, k_ref, v_ref, x_ref,
                         wo_ref, bo_ref, g2_ref, be2_ref,
                         w1_ref, b1_ref, w2_ref, b2_ref,
                         out_ref, *, scale):
    tb, nh, pp, dh = q_ref.shape                             # batch tile, heads, patches, head dim
    g = tb * nh

    # Leading-dims-only reshapes (last two dims unchanged) -> no lane relayout.
    q = q_ref[...].reshape(g, pp, dh)                        # (TB*H, P, Dh) bf16
    k = k_ref[...].reshape(g, pp, dh)
    v = v_ref[...].reshape(g, pp, dh)

    # scores = q @ k^T / sqrt(model_dim)  (torch scales by dim**0.5, not head_dim)
    s = jnp.einsum("gqd,gkd->gqk", q, k,
                   preferred_element_type=jnp.float32) * scale
    s_max = jnp.max(s, axis=-1, keepdims=True)
    e = jnp.exp(s - s_max)
    denom = jnp.sum(e, axis=-1, keepdims=True)
    attn = e * pl.reciprocal(denom, approx=True)             # EUP, not VPU divide

    ho = jnp.einsum("gqk,gkd->gqd", attn.astype(v.dtype), v,
                    preferred_element_type=jnp.float32)      # (TB*H, P, Dh) f32
    ho = ho.reshape(tb, nh, pp, dh)
    # torch: (attn @ v).transpose(1, 2).reshape(B, P, D)
    # -> concat heads along lanes in registers: one lane-dense (TB*P, D) value,
    #    no scratch buffer and no masked partial-lane stores.
    o = jnp.concatenate([ho[:, h] for h in range(nh)], axis=-1)   # (TB, P, D)
    o = o.reshape(tb * pp, nh * dh)                               # (TB*P, D)

    x = x_ref[...]                                           # (TB*P, D) f32 (residual)
    proj = jnp.dot(o.astype(jnp.bfloat16), wo_ref[...],
                   preferred_element_type=jnp.float32) + bo_ref[...]
    internal = proj + x

    y = _layernorm(internal, g2_ref[...], be2_ref[...])
    h1 = jnp.dot(y.astype(jnp.bfloat16), w1_ref[...],
                 preferred_element_type=jnp.float32) + b1_ref[...]
    # exact GELU (torch nn.GELU default, erf-based)
    h1 = 0.5 * h1 * (1.0 + jax.lax.erf(h1 * (1.0 / math.sqrt(2.0))))
    m = jnp.dot(h1.astype(jnp.bfloat16), w2_ref[...],
                preferred_element_type=jnp.float32) + b2_ref[...]
    out_ref[...] = (m + internal).astype(out_ref.dtype)


# ---------------------------------- tiling helpers ---------------------------------
def _pick_row_tile(n_rows, target=512):
    """Largest multiple-of-8 divisor of n_rows <= target that leaves >= 2 grid steps
    (so v7x's two TensorCores both get work). Falls back to one full tile."""
    cap = min(n_rows // 2, target)
    for t in range(cap, 0, -1):
        if n_rows % t == 0 and t % 8 == 0:
            return t
    return n_rows


def _pick_batch_tile(batch, rows_per_batch, target_rows=512):
    """Batch tile so TB*P ~ target_rows while keeping grid >= 2 when batch >= 2."""
    cap = min(batch // 2, max(1, target_rows // max(rows_per_batch, 1)))
    for t in range(cap, 0, -1):
        if batch % t == 0:
            return t
    return batch


def _maybe_vmem_limit(bytes_needed):
    """Only raise the scoped-VMEM limit when the (double-buffered) working set exceeds the
    most conservative chip default (16 MiB on v5e); otherwise keep compiler defaults."""
    if bytes_needed <= (16 << 20):
        return None
    return int(min(bytes_needed + (4 << 20), 64 << 20))


def _vmem_estimate_a(tr, d):
    return (2 * (tr * d * 4 + 3 * tr * d * 2 + d * 3 * d * 2 + 3 * d * 4 + 2 * d * 4)
            + tr * 3 * d * 4)


def _vmem_estimate_b(tb, h, p, dh, d, e):
    rows = tb * p
    return (2 * (3 * tb * h * p * max(dh, 128) * 2        # q/k/v blocks (lane-padded)
                 + 2 * rows * d * 4                       # x + out blocks
                 + (d * d + d * e + e * d) * 2            # wo, w1, w2 (bf16)
                 + (3 * d + e) * 4)
            + 2 * tb * h * p * p * 4                      # scores + attn
            + rows * e * 4 + 3 * rows * d * 4)            # MLP hidden + misc f32 temps


# ---------------------------------- Wrapper -----------------------------------------
def encoder_block(x, p, *, num_heads):
    B, P, D = x.shape
    H = num_heads
    assert D % H == 0
    Dh = D // H
    E = p["w1"].shape[1]
    f32, bf16 = jnp.float32, jnp.bfloat16
    rv = lambda v: v.reshape(1, -1).astype(f32)
    bw = lambda w: w.astype(bf16)    # weights as bf16 MXU operands (f32 accumulation)

    R = B * P
    x_flat = x.reshape(R, D)         # flatten batch into the matmul M dimension

    def full(shape):
        return pl.BlockSpec(shape, lambda i: (0,) * len(shape))

    # --- Kernel A: LN1 + fused QKV over row tiles of the flattened (B*P, D) rows ----
    wqkv = bw(jnp.concatenate([p["wq"], p["wk"], p["wv"]], axis=1))      # (D, 3D)
    bqkv = jnp.concatenate([p["bq"], p["bk"], p["bv"]]).reshape(1, -1).astype(f32)

    TR = _pick_row_tile(R, target=512)
    row_spec = pl.BlockSpec((TR, D), lambda i: (i, 0))
    q, k, v = pl.pallas_call(
        ln_qkv_kernel,
        out_shape=(jax.ShapeDtypeStruct((R, D), bf16),) * 3,
        grid=(R // TR,),
        in_specs=[row_spec, full((1, D)), full((1, D)),
                  full((D, 3 * D)), full((1, 3 * D))],
        out_specs=(row_spec,) * 3,
        compiler_params=pltpu.CompilerParams(
            dimension_semantics=("parallel",),
            vmem_limit_bytes=_maybe_vmem_limit(_vmem_estimate_a(TR, D))),
    )(x_flat, rv(p["ln1_g"]), rv(p["ln1_b"]), wqkv, bqkv)

    # torch head split: reshape(B, H, P, D//H) of the (B, P, D) projections (a flat
    # rechunk that changes the minor/lane dim) -> done as XLA glue on bf16 data.
    qh = q.reshape(B, H, P, Dh)
    kh = k.reshape(B, H, P, Dh)
    vh = v.reshape(B, H, P, Dh)

    # --- Kernel B: attention + out-proj + residual + LN2 + MLP + residual ------------
    TB = _pick_batch_tile(B, P, target_rows=512)
    head_spec = pl.BlockSpec((TB, H, P, Dh), lambda i: (i, 0, 0, 0))
    act_spec = pl.BlockSpec((TB * P, D), lambda i: (i, 0))
    out_flat = pl.pallas_call(
        functools.partial(attn_proj_mlp_kernel, scale=1.0 / math.sqrt(D)),
        out_shape=jax.ShapeDtypeStruct((R, D), f32),
        grid=(B // TB,),
        in_specs=[head_spec, head_spec, head_spec, act_spec,
                  full((D, D)), full((1, D)),
                  full((1, D)), full((1, D)),
                  full((D, E)), full((1, E)),
                  full((E, D)), full((1, D))],
        out_specs=act_spec,
        compiler_params=pltpu.CompilerParams(
            dimension_semantics=("parallel",),
            vmem_limit_bytes=_maybe_vmem_limit(_vmem_estimate_b(TB, H, P, Dh, D, E))),
    )(qh, kh, vh, x_flat,
      bw(p["wo"]), rv(p["bo"]),
      rv(p["ln2_g"]), rv(p["ln2_b"]),
      bw(p["w1"]), rv(p["b1"]), bw(p["w2"]), rv(p["b2"]))

    return out_flat.reshape(B, P, D)


# ----------------------------- plain-JAX reference ----------------------------------
def encoder_block_ref(x, p, *, num_heads):
    B, P, D = x.shape
    H = num_heads
    Dh = D // H

    def ln(v, g, b):
        m = v.mean(-1, keepdims=True)
        var = ((v - m) ** 2).mean(-1, keepdims=True)
        return (v - m) / jnp.sqrt(var + LN_EPS) * g + b

    xn = ln(x, p["ln1_g"], p["ln1_b"])
    q = (xn @ p["wq"] + p["bq"]).reshape(B, H, P, Dh)
    k = (xn @ p["wk"] + p["bk"]).reshape(B, H, P, Dh).transpose(0, 1, 3, 2)
    v = (xn @ p["wv"] + p["bv"]).reshape(B, H, P, Dh)
    s = (q @ k) / D ** 0.5
    a = jax.nn.softmax(s, axis=-1)
    o = (a @ v).transpose(0, 2, 1, 3).reshape(B, P, D)
    o = o @ p["wo"] + p["bo"]
    internal = o + x
    y = ln(internal, p["ln2_g"], p["ln2_b"])
    h = jax.nn.gelu(y @ p["w1"] + p["b1"], approximate=False)
    m = h @ p["w2"] + p["b2"]
    return m + internal


def init_params(key, dim, expansion):
    E = dim * expansion
    ks = jax.random.split(key, 12)
    n = lambda k, shape, s=0.02: (s * jax.random.normal(k, shape)).astype(jnp.float32)
    return {
        "ln1_g": jnp.ones((dim,), jnp.float32), "ln1_b": jnp.zeros((dim,), jnp.float32),
        "wq": n(ks[0], (dim, dim)), "bq": n(ks[1], (dim,)),
        "wk": n(ks[2], (dim, dim)), "bk": n(ks[3], (dim,)),
        "wv": n(ks[4], (dim, dim)), "bv": n(ks[5], (dim,)),
        "wo": n(ks[6], (dim, dim)), "bo": n(ks[7], (dim,)),
        "ln2_g": jnp.ones((dim,), jnp.float32), "ln2_b": jnp.zeros((dim,), jnp.float32),
        "w1": n(ks[8], (dim, E)), "b1": n(ks[9], (E,)),
        "w2": n(ks[10], (E, dim)), "b2": n(ks[11], (dim,)),
    }


if __name__ == "__main__":
    B, P, D, H = 2, 8, 32, 4  # batch, patches (seq), model dim, heads
    key = jax.random.PRNGKey(0)
    kx, kp = jax.random.split(key)
    x = jax.random.normal(kx, (B, P, D), dtype=jnp.float32)
    params = init_params(kp, D, expansion=4)

    out = jax.block_until_ready(encoder_block(x, params, num_heads=H))

    ref = encoder_block_ref(x, params, num_heads=H)
    assert out.shape == ref.shape == (B, P, D)
    # bf16 matmul operands (f32 accumulation) => loosen tolerance vs the f32 reference.
    assert jnp.allclose(out, ref, atol=1e-2, rtol=1e-2), "mismatch vs JAX reference"

    print("KERNEL_OK")
</pallas_src>

<mosaic_0001>
module attributes {stable_mosaic.version = 11 : i64} {
  func.func @ln_qkv_kernel(%arg0: i32, %arg1: memref<8x32xf32, #tpu.memory_space<vmem>>, %arg2: memref<1x32xf32, #tpu.memory_space<vmem>>, %arg3: memref<1x32xf32, #tpu.memory_space<vmem>>, %arg4: memref<32x96xbf16, #tpu.memory_space<vmem>>, %arg5: memref<1x96xf32, #tpu.memory_space<vmem>>, %arg6: memref<8x32xbf16, #tpu.memory_space<vmem>>, %arg7: memref<8x32xbf16, #tpu.memory_space<vmem>>, %arg8: memref<8x32xbf16, #tpu.memory_space<vmem>>) attributes {dimension_semantics = [#tpu.dimension_semantics<parallel>], iteration_bounds = array<i64: 2>, scalar_prefetch = 0 : i64, scratch_operands = 0 : i64, tpu.core_type = #tpu.core_type<tc>, window_params = [{transform_indices = @transform_0, window_bounds = array<i64: 8, 32>}, {pipeline_mode = #tpu.pipeline_mode<synchronous>, transform_indices = @transform_1, window_bounds = array<i64: 1, 32>}, {pipeline_mode = #tpu.pipeline_mode<synchronous>, transform_indices = @transform_2, window_bounds = array<i64: 1, 32>}, {pipeline_mode = #tpu.pipeline_mode<synchronous>, transform_indices = @transform_3, window_bounds = array<i64: 32, 96>}, {pipeline_mode = #tpu.pipeline_mode<synchronous>, transform_indices = @transform_4, window_bounds = array<i64: 1, 96>}, {transform_indices = @transform_5, window_bounds = array<i64: 8, 32>}, {transform_indices = @transform_6, window_bounds = array<i64: 8, 32>}, {transform_indices = @transform_7, window_bounds = array<i64: 8, 32>}]} {
    %c0 = arith.constant 0 : index
    %c0_0 = arith.constant 0 : index
    %0 = vector.load %arg1[%c0, %c0_0] : memref<8x32xf32, #tpu.memory_space<vmem>>, vector<8x32xf32>
    %c0_1 = arith.constant 0 : index
    %c0_2 = arith.constant 0 : index
    %1 = vector.load %arg2[%c0_1, %c0_2] : memref<1x32xf32, #tpu.memory_space<vmem>>, vector<1x32xf32>
    %c0_3 = arith.constant 0 : index
    %c0_4 = arith.constant 0 : index
    %2 = vector.load %arg3[%c0_3, %c0_4] : memref<1x32xf32, #tpu.memory_space<vmem>>, vector<1x32xf32>
    %cst = arith.constant dense<0.000000e+00> : vector<8xf32>
    %3 = vector.multi_reduction <add>, %0, %cst [1] : vector<8x32xf32> to vector<8xf32>
    %4 = vector.shape_cast %3 : vector<8xf32> to vector<8x1xf32>
    %cst_5 = arith.constant 3.200000e+01 : f32
    %5 = vector.broadcast %cst_5 : f32 to vector<8x1xf32>
    %6 = arith.divf %4, %5 : vector<8x1xf32>
    %7 = vector.broadcast %6 : vector<8x1xf32> to vector<8x32xf32>
    %8 = arith.subf %0, %7 : vector<8x32xf32>
    %9 = arith.mulf %8, %8 : vector<8x32xf32>
    %cst_6 = arith.constant dense<0.000000e+00> : vector<8xf32>
    %10 = vector.multi_reduction <add>, %9, %cst_6 [1] : vector<8x32xf32> to vector<8xf32>
    %11 = vector.shape_cast %10 : vector<8xf32> to vector<8x1xf32>
    %cst_7 = arith.constant 3.200000e+01 : f32
    %12 = vector.broadcast %cst_7 : f32 to vector<8x1xf32>
    %13 = arith.divf %11, %12 : vector<8x1xf32>
    %cst_8 = arith.constant 9.99999974E-6 : f32
    %14 = vector.broadcast %cst_8 : f32 to vector<8x1xf32>
    %15 = arith.addf %13, %14 : vector<8x1xf32>
    %16 = math.rsqrt %15 : vector<8x1xf32>
    %17 = vector.broadcast %6 : vector<8x1xf32> to vector<8x32xf32>
    %18 = arith.subf %0, %17 : vector<8x32xf32>
    %19 = vector.broadcast %16 : vector<8x1xf32> to vector<8x32xf32>
    %20 = arith.mulf %18, %19 : vector<8x32xf32>
    %21 = vector.broadcast %1 : vector<1x32xf32> to vector<8x32xf32>
    %22 = arith.mulf %20, %21 : vector<8x32xf32>
    %23 = vector.broadcast %2 : vector<1x32xf32> to vector<8x32xf32>
    %24 = arith.addf %22, %23 : vector<8x32xf32>
    %25 = arith.truncf %24 : vector<8x32xf32> to vector<8x32xbf16>
    %c0_9 = arith.constant 0 : index
    %c0_10 = arith.constant 0 : index
    %26 = vector.load %arg4[%c0_9, %c0_10] : memref<32x96xbf16, #tpu.memory_space<vmem>>, vector<32x96xbf16>
    %cst_11 = arith.constant dense<0.000000e+00> : vector<8x96xf32>
    %27 = tpu.matmul %25, %26, %cst_11 {dimension_numbers = #tpu.dot_dimension_numbers<[1], [0], [0], [1], [0, 0, 1, 1], [], []>} : vector<8x32xbf16>, vector<32x96xbf16>, vector<8x96xf32> -> vector<8x96xf32>
    %c0_12 = arith.constant 0 : index
    %c0_13 = arith.constant 0 : index
    %28 = vector.load %arg5[%c0_12, %c0_13] : memref<1x96xf32, #tpu.memory_space<vmem>>, vector<1x96xf32>
    %29 = vector.broadcast %28 : vector<1x96xf32> to vector<8x96xf32>
    %30 = arith.addf %27, %29 : vector<8x96xf32>
    %31 = vector.extract_strided_slice %30 {offsets = [0, 0], sizes = [8, 32], strides = [1, 1]} : vector<8x96xf32> to vector<8x32xf32>
    %32 = arith.truncf %31 : vector<8x32xf32> to vector<8x32xbf16>
    %c0_14 = arith.constant 0 : index
    %c0_15 = arith.constant 0 : index
    %33 = vector.load %arg6[%c0_14, %c0_15] : memref<8x32xbf16, #tpu.memory_space<vmem>>, vector<8x32xbf16>
    tpu.vector_store %arg6[%c0_14, %c0_15], %32 {strides = array<i32>} : memref<8x32xbf16, #tpu.memory_space<vmem>>, vector<8x32xbf16>,
    %34 = vector.extract_strided_slice %30 {offsets = [0, 32], sizes = [8, 32], strides = [1, 1]} : vector<8x96xf32> to vector<8x32xf32>
    %35 = arith.truncf %34 : vector<8x32xf32> to vector<8x32xbf16>
    %c0_16 = arith.constant 0 : index
    %c0_17 = arith.constant 0 : index
    %36 = vector.load %arg7[%c0_16, %c0_17] : memref<8x32xbf16, #tpu.memory_space<vmem>>, vector<8x32xbf16>
    tpu.vector_store %arg7[%c0_16, %c0_17], %35 {strides = array<i32>} : memref<8x32xbf16, #tpu.memory_space<vmem>>, vector<8x32xbf16>,
    %37 = vector.extract_strided_slice %30 {offsets = [0, 64], sizes = [8, 32], strides = [1, 1]} : vector<8x96xf32> to vector<8x32xf32>
    %38 = arith.truncf %37 : vector<8x32xf32> to vector<8x32xbf16>
    %c0_18 = arith.constant 0 : index
    %c0_19 = arith.constant 0 : index
    %39 = vector.load %arg8[%c0_18, %c0_19] : memref<8x32xbf16, #tpu.memory_space<vmem>>, vector<8x32xbf16>
    tpu.vector_store %arg8[%c0_18, %c0_19], %38 {strides = array<i32>} : memref<8x32xbf16, #tpu.memory_space<vmem>>, vector<8x32xbf16>,
    return
  }
  func.func @transform_0(%arg0: i32) -> (i32, i32) {
    %c0_i32 = arith.constant 0 : i32
    %c0_i32_0 = arith.constant 0 : i32
    return %arg0, %c0_i32 : i32, i32
  }
  func.func @transform_1(%arg0: i32) -> (i32, i32) {
    %c0_i32 = arith.constant 0 : i32
    %c0_i32_0 = arith.constant 0 : i32
    %c0_i32_1 = arith.constant 0 : i32
    return %c0_i32, %c0_i32_0 : i32, i32
  }
  func.func @transform_2(%arg0: i32) -> (i32, i32) {
    %c0_i32 = arith.constant 0 : i32
    %c0_i32_0 = arith.constant 0 : i32
    %c0_i32_1 = arith.constant 0 : i32
    return %c0_i32, %c0_i32_0 : i32, i32
  }
  func.func @transform_3(%arg0: i32) -> (i32, i32) {
    %c0_i32 = arith.constant 0 : i32
    %c0_i32_0 = arith.constant 0 : i32
    %c0_i32_1 = arith.constant 0 : i32
    return %c0_i32, %c0_i32_0 : i32, i32
  }
  func.func @transform_4(%arg0: i32) -> (i32, i32) {
    %c0_i32 = arith.constant 0 : i32
    %c0_i32_0 = arith.constant 0 : i32
    %c0_i32_1 = arith.constant 0 : i32
    return %c0_i32, %c0_i32_0 : i32, i32
  }
  func.func @transform_5(%arg0: i32) -> (i32, i32) {
    %c0_i32 = arith.constant 0 : i32
    %c0_i32_0 = arith.constant 0 : i32
    return %arg0, %c0_i32 : i32, i32
  }
  func.func @transform_6(%arg0: i32) -> (i32, i32) {
    %c0_i32 = arith.constant 0 : i32
    %c0_i32_0 = arith.constant 0 : i32
    return %arg0, %c0_i32 : i32, i32
  }
  func.func @transform_7(%arg0: i32) -> (i32, i32) {
    %c0_i32 = arith.constant 0 : i32
    %c0_i32_0 = arith.constant 0 : i32
    return %arg0, %c0_i32 : i32, i32
  }
}

</mosaic_0001>

<bundles_post_ra>
// kernel: tpu_custom_call.1
= control target key start
LH: loop header
LB: loop body
LE: loop exit
PB: predicated region body
PF: predicated region fallthrough
CT: control target
= control target key end

     0   :  { %13 = vsyncpa [#allocation3], 0  ;;  %s1283_s0 = inlined_call_operand.hbm [shape: f32[16,32], index: 0, kind: input, shape index: {}]   ;;  %s1284_s1 = inlined_call_operand.vmem [shape: f32[1,32], index: 1, kind: input, shape index: {}]   ;;  %s1285_s2 = inlined_call_operand.vmem [shape: f32[1,32], index: 2, kind: input, shape index: {}]   ;;  %s1286_s3 = inlined_call_operand.hbm [shape: bf16[32,96], index: 3, kind: input, shape index: {}]   ;;  %s1287_s4 = inlined_call_operand.vmem [shape: f32[1,96], index: 4, kind: input, shape index: {}]   ;;  %s1288_s5 = inlined_call_operand.hbm [shape: bf16[16,32], index: 5, kind: output, shape index: {0}]   ;;  %s1289_s6 = inlined_call_operand.hbm [shape: bf16[16,32], index: 6, kind: output, shape index: {1}]   ;;  %s1290_s7 = inlined_call_operand.hbm [shape: bf16[16,32], index: 7, kind: output, shape index: {2}]  }
   0x1   :  { %15 = vsyncpa [#allocation3 + $0x1], 0 }
   0x2   :  { %16 = vsyncpa [#allocation6], 0 }
   0x3   :  { %17 = vsyncpa [#allocation4], 0 }
   0x4   :  { %19 = vsyncpa [#allocation4 + $0x1], 0 }
   0x5   :  { %20 = vsyncpa [#allocation9], 0 }
   0x6   :  { %22 = vsyncpa [#allocation9 + $0x1], 0  ;;  %s989_s24 = smov 0   ;;  %s991_s25 = smov 0  }
   0x7   :  { %s993_s26 = smov 0   ;;  %s995_s27 = smov 0  }
   0x8 LB: > { %s1010_s28 = sadd.s32 4294967295, %s936_s27   ;;  %s1294_s29 = sadd.s32 4294967294, %s936_s27   ;;  %s936_s27 = sphi %s995_s27, %s1312_s27   ;;  %s932_s26 = sphi %s993_s26, %s1311_s26   ;;  %s928_s25 = sphi %s991_s25, %s1310_s25   ;;  %s924_s24 = sphi %s989_s24, %s1309_s24  }
   0x9   : > { %p48_p0 = scmp.ne.s32.totalorder %s928_s25, %s924_s24  ;;  %p1291_p1 = scmp.eq.s32.totalorder %s1010_s28, 0 }
   0xa   : > { %p162_p3 = scmp.eq.s32.totalorder %s1294_s29, 1  ;;  %p633_p5 = scmp.ge.s32.totalorder %s936_s27, 1 }
   0xb   : > { %p1021_p4 = por %p1291_p1, %p48_p0  ;;  %p221_p7 = scmp.lt.s32.totalorder %s936_s27, 3 }
   0xc   : > { %p1026_p6 = por %p162_p3, %p48_p0  ;;  %s938_s10 = smov [#allocation5]  }
   0xd   : > { %s1295_s30 = scalar_select %p1021_p4, 1, 0 }
   0xe   : > { %s1296_s8 = scalar_select %p1026_p6, 1, 0 }
   0xf   : > { %p1031_p8 = pnand %p633_p5, %p221_p7  ;;  %s239_s11 = sshll.u32 %s938_s10, 4  ;;  %s1035_s11 = int_to_ptr.vmem [resolvable:$true] %s239_s11 }
  0x10   : > { %s1047_s13 = sadd.s32 1, %s936_s27   ;;  %s35_s14 = sadd.s32 1, %s932_s26 }
  0x11   : > { %s1297_s9 = scalar_select %p1031_p8, 1, 0 }
  0x12   : > { %p683_p9 = pneg %p1031_p8  ;;  %s32_s15 = ssub.s32 %s936_s27, %s1047_s13 }
  0x13   : > { %s748_s18 = scalar_lea.hbm %s1286_s3, 256 }
  0x14   : > { %p1042_p11 = pnand %p683_p9, %p1291_p1  ;;  %p749_p12 = scmp.ne.s32.totalorder %s1286_s3, %s748_s18 }
  0x15   : > { %p755_p5 = scmp.lt.u32.totalorder %s748_s18, %s1286_s3 }
  0x16   : > { %p750_p13 = pneg %p1042_p11 }
  0x18   : > { %p751_p0 = pnand %p750_p13, %p749_p12 }
  0x1a   : > { %p752_p3 = pneg %p751_p0 }
  0x1c   : > { %p757_p7 = pnand %p755_p5, %p752_p3 }
  0x1e   : > { %760 = shalt.err (!%p757_p7)
}
  0x1f   : > { %s761_s23 = scalar_lea.vmem %s1035_s11, 256  ;;  %p769_p2 = scmp.lt.s32.totalorder %s1035_s11, %s1035_s11 }
  0x20   : > { %p762_p9 = scmp.ne.s32.totalorder %s1035_s11, %s761_s23  ;;  %p770_p6 = scmp.lt.s32.totalorder %s761_s23, %s761_s23 }
  0x22   : > { %p764_p10 = pnand %p762_p9, %p750_p13  ;;  %p771_p4 = por %p770_p6, %p769_p2 }
  0x24   : > { %p765_p1 = pneg %p764_p10 }
  0x26   : > { %p772_p8 = pnand %p771_p4, %p765_p1 }
  0x28   : > { %775 = shalt.err (!%p772_p8)
}
  0x29   : > { %s939_s10 = smov 64   ;;  %s940_s16 = smov 4  }
  0x2a   : > { %686 = dma.hbm_to_vmem [thread:$0]  (!%p1042_p11), %s1286_s3, 256, %s1035_s11, [#allocation6], %s939_s10, %s939_s10, %s940_s16  }
  0x2b   : > { %p33_p2 = scmp.eq.s32.totalorder %s32_s15, 0  ;;  %p42_p1 = scmp.ne.s32.totalorder %s932_s26, %s928_s25 }
  0x2c   : > { %p43_p4 = scmp.eq.s32.totalorder %s936_s27, 0  ;;  %p702_p6 = scmp.lt.s32.totalorder %s936_s27, 2 }
  0x2d   : > { %s1078_s19 = scalar_select %p33_p2, %s932_s26, %s35_s14  }
  0x2e   : > { %p44_p8 = por %p43_p4, %p42_p1  ;;  %p1299_p10 = scmp.eq.s32.totalorder %s1010_s28, 1 }
  0x2f   : > { %s256_s21 = sand.u32 1, %s932_s26   ;;  %s637_s22 = sshll.u32 %s936_s27, 7 }
  0x30   : > { %p1082_p12 = por %p1299_p10, %p42_p1  ;;  %s636_s23 = sshll.u32 %s256_s21, 3 }
  0x31   : > { %s1091_s17 = scalar_lea.hbm %s1283_s0, %s637_s22  ;;  %s260_s11 = scalar_lea.vmem [#allocation2], %s636_s23 }
  0x32   : > { %s267_s14 = sshll.u32 %s260_s11, 4  ;;  %p1093_p11 = pnand %p702_p6, %p44_p8  ;;  %s1097_s14 = int_to_ptr.vmem [resolvable:$true] %s267_s14 }
  0x33   : > { %s257_s10 = scalar_lea.sflag [#allocation3], %s256_s21  ;;  %s776_s16 = scalar_lea.hbm %s1091_s17, 128 }
  0x34   : > { %p777_p13 = scmp.ne.s32.totalorder %s1091_s17, %s776_s16  ;;  %p778_p0 = pneg %p1093_p11 }
  0x35   : > { %s781_s22 = scalar_lea.hbm %s1283_s0, 256  ;;  %p782_p7 = scmp.lt.u32.totalorder %s1091_s17, %s1283_s0 }
  0x36   : > { %p779_p3 = pnand %p778_p0, %p777_p13  ;;  %p783_p9 = scmp.lt.u32.totalorder %s781_s22, %s776_s16 }
  0x37   : > { %p785_p1 = scmp.lt.u32.totalorder %s776_s16, %s1091_s17 }
  0x38   : > { %p780_p5 = pneg %p779_p3  ;;  %p784_p2 = por %p783_p9, %p782_p7 }
  0x3a   : > { %p786_p4 = por %p785_p1, %p784_p2 }
  0x3c   : > { %p787_p6 = pnand %p786_p4, %p780_p5 }
  0x3e   : > { %790 = shalt.err (!%p787_p6)
}
  0x3f   : > { %s791_s21 = scalar_lea.vmem %s1097_s14, 128  ;;  %s941_s11 = smov [#allocation2]  }
  0x40   : > { %p792_p8 = scmp.ne.s32.totalorder %s1097_s14, %s791_s21  ;;  %s796_s29 = sshll.u32 %s941_s11, 4  ;;  %s797_s29 = int_to_ptr.vmem [resolvable:$false] %s796_s29 }
  0x41   : > { %s798_s18 = scalar_lea.vmem %s797_s29, 256  ;;  %p799_p3 = scmp.lt.s32.totalorder %s1097_s14, %s797_s29 }
  0x42   : > { %p794_p10 = pnand %p792_p8, %p778_p0  ;;  %p800_p7 = scmp.lt.s32.totalorder %s798_s18, %s791_s21 }
  0x44   : > { %p795_p13 = pneg %p794_p10  ;;  %p801_p9 = por %p800_p7, %p799_p3 }
  0x46   : > { %p802_p2 = pnand %p801_p9, %p795_p13 }
  0x48   : > { %805 = shalt.err (!%p802_p2)
}
  0x49   : > { %690 = dma.hbm_to_vmem [thread:$0]  (!%p1093_p11), %s1091_s17, 128, %s1097_s14, %s257_s10  }
  0x4a   : > { %p1302_p5 = scmp.ne.s32.totalorder %s1297_s9, 0 }
  0x4b   : > { %s1127_s16 = sand.u32 (!%p1302_p5), 1, %s928_s25   ;;  %p1303_p0 = scmp.ne.s32.totalorder (!%p1302_p5), %s1295_s30, 0 }
  0x4c   : > { %276 = sbr.rel (%p1302_p5) target bundleno = 771 (0x303), region = 40  ;;  %s639_s22 = sshll.u32 (!%p1302_p5), %s1127_s16, 3 }
  0x4d   : > { %s279_s23 = scalar_lea.sflag (!%p1302_p5), [#allocation3], %s1127_s16  ;;  %s282_s12 = scalar_lea.vmem (!%p1302_p5), [#allocation2], %s639_s22 }
  0x53   : > { %907 = dma.done.wait (%p1303_p0), %s279_s23, 128  }
  0x54   : > { %909 = vsyncadd (%p1303_p0), %s279_s23, 4294967168  ;;  %p1304_p1 = scmp.eq.s32.totalorder %s1010_s28, 0 }
  0x56   : > { %911 = dma.done.wait (%p1304_p1), [#allocation6], 256   ;;  %p1305_p11 = pmov %p1304_p1 }
  0x57   : > { %vm331_vm0 = vcmask 261120   ;;  %v328_v0 = vld [vmem:[%s282_s12] sm:$0xff]  ;;  %v744_v7 = vld [vmem:[#allocation5] sm:$0xff]   ;;  %v942_v8 = vmov 0.0   ;;  %v745_v9 = vld [vmem:[#allocation5 + $0x8] sm:$0xff]   ;;  %vm943_vm1 = vmmov 0  }
  0x58   : > { %913 = vsyncadd (%p1305_p11), [#allocation6], 4294967040  ;;  %v332_v1 = vsel %vm331_vm0, %v328_v0, 0.0  ;;  %663 = vmatprep.subr.bf16.mxu0 %v942_v8  ;;  %667 = vmatprep.mubr.msk.bf16.mxu0 %vm943_vm1, %v942_v8  ;;  %v644_v14 = vld [vmem:[%s1284_s1] ss:$0 sm:$0xff]  ;;  %s1149_s15 = sshll.u32 %s1127_s16, 2 }
  0x59   : > { %333 = vadd.xlane.f32.xlu0 %v332_v1  ;;  %664 = vmatpush3.bf16.msra.mxu0 %v744_v7  ;;  %v645_v16 = vld [vmem:[%s1285_s2] ss:$0 sm:$0xff]  ;;  %s1155_s11 = sshll.u32 %s1010_s28, 6  ;;  %s312_s29 = scalar_lea.vmem [#allocation7], %s1149_s15  ;;  %vm428_vm2 = vcmask 257024  }
  0x5a   : > { %665 = vmatprep.subr.bf16.mxu0 %v942_v8  ;;  %v646_v20 = vld [vmem:[%s1287_s4] ss:$0 sm:$0xff]  ;;  %s465_s18 = sshll.u32 %s312_s29, 4  ;;  %s1162_s12 = scalar_lea.hbm %s1288_s5, %s1155_s11  ;;  %s1164_s18 = int_to_ptr.vmem [resolvable:$true] %s465_s18 }
  0x5b   : > { %s944_s30 = smov 96   ;;  %s442_s9 = scalar_lea.sflag [#allocation4], %s1127_s16 }
  0x5c   : > { %s806_s17 = scalar_lea.vmem %s1164_s18, 64  ;;  %s945_s14 = smov [#allocation7]  }
  0x5d   : > { %666 = vmatpush3.bf16.msra.mxu0 %v745_v9  ;;  %p807_p4 = scmp.ne.s32.totalorder %s1164_s18, %s806_s17  ;;  %s810_s10 = sshll.u32 %s945_s14, 4  ;;  %s811_s10 = int_to_ptr.vmem [resolvable:$false] %s810_s10 }
  0x5e   : > { %s812_s21 = scalar_lea.vmem %s811_s10, 128  ;;  %p813_p10 = scmp.lt.s32.totalorder %s1164_s18, %s811_s10 }
  0x5f   : > { %p808_p6 = pnand %p807_p4, %p1082_p12  ;;  %p814_p13 = scmp.lt.s32.totalorder %s812_s21, %s806_s17 }
  0x61   : > { %p809_p8 = pneg %p808_p6  ;;  %p815_p3 = por %p814_p13, %p813_p10 }
  0x63   : > { %p816_p7 = pnand %p815_p3, %p809_p8 }
  0xe6   : > { %v334_v2 = vpop.xlane.xlu0 %333 }
  0xe7   : > { %v336_v3 = vmul.f32 0.03125, %v334_v2 }
  0xe9   : > { %v337_v4 = vsub.f32 %v328_v0, %v336_v3 }
  0xeb   : > { %v338_v5 = vmul.f32 %v337_v4, %v337_v4 }
  0xed   : > { %v339_v6 = vsel %vm331_vm0, %v338_v5, 0.0 }
  0xee   : > { %340 = vadd.xlane.f32.xlu0 %v339_v6 }
 0x17b   : > { %v341_v10 = vpop.xlane.xlu0 %340 }
 0x17c   : > { %v342_v11 = vmul.f32 0.03125, %v341_v10 }
 0x17e   : > { %v343_v12 = vadd.f32 1e-05, %v342_v11 }
 0x180   : > { %746 = vrsqrt.f32 %v343_v12 }
 0x18a   : > { %v747_v13 = vpop.eup %746 }
 0x18b   : > { %v345_v15 = vmul.f32 %v747_v13, %v337_v4 }
 0x18d   : > { %v352_v17 = vmul.f32 %v644_v14, %v345_v15 }
 0x18f   : > { %v359_v18 = vadd.f32 %v645_v16, %v352_v17 }
 0x191   : > { %v360_v19 = vpack.c.bf16 %v359_v18, %v359_v18 }
 0x193   : > { %668 = vmatmul.mubr.msk.bf16.vlgmr.msra.gmra.mrb[0].mxu0 %vm331_vm0, %v360_v19 }
 0x266   : > { %v421_v21 = vpop.f32.mrb[0].mxu0 }
 0x267   : > { %v422_v22 = vadd.f32 %v646_v20, %v421_v21  ;;  %v669_v23 = vpop.f32.mrb[1].mxu0 }
 0x268   : > { %v424_v24 = vpop.f32.mrb[2].mxu0 }
 0x269   : > { %v427_v25 = vpack.c.bf16 %v422_v22, %v422_v22  ;;  %v670_v26 = vpop.f32.mrb[3].mxu0 }
 0x26b   : > { %433 = vrot.lane.b32.xlu1 %v427_v25, %s944_s30  ;;  %429 = vst.msk [vmem:[%s312_s29] sm:$0xf] %vm428_vm2, %v427_v25 }
 0x26c   : > { %819 = shalt.err (!%p816_p7)
}
 0x26d   : > { %s820_s16 = scalar_lea.hbm %s1162_s12, 64  ;;  %s824_s23 = scalar_lea.hbm %s1288_s5, 128 }
 0x26e   : > { %p821_p9 = scmp.ne.s32.totalorder %s1162_s12, %s820_s16  ;;  %p825_p0 = scmp.lt.u32.totalorder %s1162_s12, %s1288_s5 }
 0x26f   : > { %p826_p1 = scmp.lt.u32.totalorder %s824_s23, %s820_s16  ;;  %p828_p4 = scmp.lt.u32.totalorder %s820_s16, %s1162_s12 }
 0x270   : > { %p822_p2 = pnand %p821_p9, %p1082_p12 }
 0x271   : > { %p827_p11 = por %p826_p1, %p825_p0 }
 0x272   : > { %p823_p5 = pneg %p822_p2 }
 0x273   : > { %p829_p6 = por %p828_p4, %p827_p11 }
 0x275   : > { %p830_p8 = pnand %p829_p6, %p823_p5 }
 0x277   : > { %833 = shalt.err (!%p830_p8)
}
 0x278   : > { %677 = dma.vmem_to_hbm [thread:$0]  (%p1082_p12), %s1164_s18, 64, %s1162_s12, %s442_s9  }
 0x279   : > { %s946_s17 = smov 64   ;;  %s446_s10 = sand.u32 1, %s1010_s28  }
 0x27a   : > { %437 = vrot.lane.b32.xlu1 %v427_v25, %s946_s17  ;;  %s319_s21 = scalar_lea.vmem [#allocation8], %s1149_s15  ;;  %s1195_s23 = scalar_lea.hbm %s1289_s6, %s1155_s11 }
 0x27b   : > { %s478_s29 = sshll.u32 %s319_s21, 4  ;;  %s326_s30 = scalar_lea.vmem [#allocation10], %s1149_s15  ;;  %s1197_s29 = int_to_ptr.vmem [resolvable:$true] %s478_s29 }
 0x27c   : > { %s1202_s14 = sshll.u32 %s326_s30, 4  ;;  %s1205_s28 = scalar_lea.sflag [#allocation9], %s446_s10  ;;  %s1236_s14 = int_to_ptr.vmem [resolvable:$true] %s1202_s14 }
 0x27d   : > { %s834_s18 = scalar_lea.vmem %s1197_s29, 64  ;;  %s947_s12 = smov [#allocation8]  }
 0x27e   : > { %p835_p10 = scmp.ne.s32.totalorder %s1197_s29, %s834_s18  ;;  %s838_s9 = sshll.u32 %s947_s12, 4  ;;  %s839_s9 = int_to_ptr.vmem [resolvable:$false] %s838_s9 }
 0x27f   : > { %s840_s17 = scalar_lea.vmem %s839_s9, 128  ;;  %p841_p7 = scmp.lt.s32.totalorder %s1197_s29, %s839_s9 }
 0x280   : > { %p836_p13 = pnand %p835_p10, %p1082_p12  ;;  %p842_p9 = scmp.lt.s32.totalorder %s840_s17, %s834_s18 }
 0x282   : > { %p837_p3 = pneg %p836_p13  ;;  %p843_p2 = por %p842_p9, %p841_p7 }
 0x284   : > { %p844_p5 = pnand %p843_p2, %p837_p3 }
 0x2dd   : > { %v434_v27 = vpop.permute.xlu1 %433 }
 0x2de   : > { %436 = vst.msk [vmem:[%s319_s21] sm:$0xf] %vm428_vm2, %v434_v27 }
 0x2df   : > { %847 = shalt.err (!%p844_p5)
}
 0x2e0   : > { %s848_s10 = scalar_lea.hbm %s1195_s23, 64  ;;  %s852_s22 = scalar_lea.hbm %s1289_s6, 128 }
 0x2e1   : > { %p849_p0 = scmp.ne.s32.totalorder %s1195_s23, %s848_s10  ;;  %p853_p4 = scmp.lt.u32.totalorder %s1195_s23, %s1289_s6 }
 0x2e2   : > { %p854_p6 = scmp.lt.u32.totalorder %s852_s22, %s848_s10  ;;  %p856_p10 = scmp.lt.u32.totalorder %s848_s10, %s1195_s23 }
 0x2e3   : > { %p850_p1 = pnand %p849_p0, %p1082_p12 }
 0x2e4   : > { %p855_p8 = por %p854_p6, %p853_p4 }
 0x2e5   : > { %p851_p11 = pneg %p850_p1 }
 0x2e6   : > { %p857_p13 = por %p856_p10, %p855_p8 }
 0x2e8   : > { %p858_p3 = pnand %p857_p13, %p851_p11 }
 0x2ea   : > { %861 = shalt.err (!%p858_p3)
}
 0x2eb   : > { %678 = dma.vmem_to_hbm [thread:$0]  (%p1082_p12), %s1197_s29, 64, %s1195_s23, %s1205_s28  }
 0x2ec   : > { %s1233_s21 = scalar_lea.hbm %s1290_s7, %s1155_s11  ;;  %v438_v28 = vpop.permute.xlu1 %437  ;;  %s862_s10 = scalar_lea.vmem %s1236_s14, 64 }
 0x2ed   : > { %440 = vst.msk [vmem:[%s326_s30] sm:$0xf] %vm428_vm2, %v438_v28  ;;  %p863_p7 = scmp.ne.s32.totalorder %s1236_s14, %s862_s10  ;;  %s948_s29 = smov [#allocation10]  }
 0x2ee   : > { %s866_s23 = sshll.u32 %s948_s29, 4  ;;  %s867_s23 = int_to_ptr.vmem [resolvable:$false] %s866_s23 }
 0x2ef   : > { %p864_p9 = pnand %p863_p7, %p1082_p12  ;;  %s868_s16 = scalar_lea.vmem %s867_s23, 128 }
 0x2f0   : > { %p869_p5 = scmp.lt.s32.totalorder %s1236_s14, %s867_s23  ;;  %p870_p0 = scmp.lt.s32.totalorder %s868_s16, %s862_s10 }
 0x2f1   : > { %p865_p2 = pneg %p864_p9 }
 0x2f2   : > { %p871_p1 = por %p870_p0, %p869_p5 }
 0x2f4   : > { %p872_p11 = pnand %p871_p1, %p865_p2 }
 0x2f6   : > { %875 = shalt.err (!%p872_p11)
}
 0x2f7   : > { %s876_s15 = scalar_lea.hbm %s1233_s21, 64  ;;  %s880_s22 = scalar_lea.hbm %s1290_s7, 128 }
 0x2f8   : > { %p877_p4 = scmp.ne.s32.totalorder %s1233_s21, %s876_s15  ;;  %p881_p10 = scmp.lt.u32.totalorder %s1233_s21, %s1290_s7 }
 0x2f9   : > { %p882_p13 = scmp.lt.u32.totalorder %s880_s22, %s876_s15  ;;  %p884_p7 = scmp.lt.u32.totalorder %s876_s15, %s1233_s21 }
 0x2fa   : > { %p878_p6 = pnand %p877_p4, %p1082_p12 }
 0x2fb   : > { %p883_p3 = por %p882_p13, %p881_p10 }
 0x2fc   : > { %p879_p8 = pneg %p878_p6 }
 0x2fd   : > { %p885_p9 = por %p884_p7, %p883_p3 }
 0x2ff   : > { %p886_p2 = pnand %p885_p9, %p879_p8 }
 0x301   : > { %889 = shalt.err (!%p886_p2)
}
 0x302   : > { %679 = dma.vmem_to_hbm [thread:$0]  (%p1082_p12), %s1236_s14, 64, %s1233_s21, %s1205_s28  }
 0x303 PF: > { %s503_s18 = sand.u32 1, %s924_s24   ;;  %p1306_p5 = scmp.ne.s32.totalorder %s1296_s8, 0 }
 0x304   : > { %p1307_p0 = scmp.ge.s32.totalorder %s936_s27, 2  ;;  %s504_s17 = scalar_lea.sflag [#allocation4], %s503_s18 }
 0x306   : > { %p692_p1 = pnand %p1307_p0, %p1306_p5 }
 0x308   : > { %915 = dma.done.wait (!%p692_p1), %s504_s17, 64  }
 0x309   : > { %917 = vsyncadd (!%p692_p1), %s504_s17, 4294967232  ;;  %s1308_s10 = sadd.s32 4294967294, %s936_s27  }
 0x30a   : > { %s512_s29 = sand.u32 1, %s1308_s10  }
 0x30b   : > { %s513_s23 = scalar_lea.sflag [#allocation9], %s512_s29 }
 0x30c   : > { %919 = dma.done.wait (!%p692_p1), %s513_s23, 128  }
 0x30d   : > { %921 = vsyncadd (!%p692_p1), %s513_s23, 4294967168  ;;  %p25_p12 = scmp.ge.s32.totalorder %s1047_s13, 4   ;;  %s1309_s24 = smov %s928_s25 }
 0x30e   : > { %s1310_s25 = smov %s932_s26  ;;  %s1311_s26 = smov %s1078_s19 }
 0x30f   : > { %s1312_s27 = smov %s1047_s13  ;;  %27 = sbr.rel (!%p25_p12) target bundleno = 8 (0x8), region = 121 }
 0x316   :  { %527 = vsyncpa [#allocation3], 1 }
 0x317   :  { %529 = vsyncpa [#allocation3 + $0x1], 1 }
 0x318   :  { %530 = vsyncpa [#allocation6], 1 }
 0x319   :  { %531 = vsyncpa [#allocation4], 1 }
 0x31a   :  { %533 = vsyncpa [#allocation4 + $0x1], 1 }
 0x31b   :  { %534 = vsyncpa [#allocation9], 1 }
 0x31c   :  { %536 = vsyncpa [#allocation9 + $0x1], 1 }

</bundles_post_ra>
